<compile_context>
chip_gen: v6e
topology: v6e:2x2x1
jax: 0.10.0
libtpu: 0.0.40
codegen_flags: <defaults>
</compile_context>

<pallas_src>
import math

import numpy as np
import jax
import jax.numpy as jnp
from jax.experimental import pallas as pl
from jax.experimental.pallas import tpu as pltpu


D_MODEL = 32
BATCH = 2

# Small CNN-like index_dict (3 conv layers with contiguous weight/bias blocks).
INDEX_DICT = {
    "layer":       [0, 1, 2],
    "kernel_size": [9, 9, 9],      # 3x3 kernels, flattened
    "channels_in": [1, 4, 8],
    "kernel_no":   [4, 8, 6],
    "idx_start":   [0, 40, 336],
}
N_LAYERS = len(INDEX_DICT["layer"])
TOTAL_TOKENS = sum(INDEX_DICT["kernel_no"])                       # 18
CHECKPOINT_LEN = (
    INDEX_DICT["idx_start"][-1]
    + INDEX_DICT["kernel_no"][-1]
    * (INDEX_DICT["kernel_size"][-1] * INDEX_DICT["channels_in"][-1] + 1)
)                                                                 # 774


def _i_dim(l):
    return INDEX_DICT["kernel_size"][l] * INDEX_DICT["channels_in"][l] + 1


# Augmented per-layer width = i_dim + 1 (extra 1.0 column folds the Linear bias)
AUG_DIMS = [_i_dim(l) + 1 for l in range(N_LAYERS)]
K_CAT = sum(AUG_DIMS)                                             # 123
K_PAD = 128                                                       # lane-aligned K
COL_OFF = [sum(AUG_DIMS[:l]) for l in range(N_LAYERS)]


# --------------------------------------------------------------------------- #
# Exact clone of EmbedderNeuronGroup_index.get_kernel_slices (for reference)   #
# --------------------------------------------------------------------------- #
def get_kernel_slices(index_dict):
    slice_lst = []
    for idx in range(len(index_dict["layer"])):
        ks = index_dict["kernel_size"][idx]
        ci = index_dict["channels_in"][idx]
        kn = index_dict["kernel_no"][idx]
        st = index_dict["idx_start"][idx]
        kernel_slice_lst = []
        for kdx in range(kn):
            kernel_start = st + kdx * ks * ci
            kernel_end = kernel_start + ks * ci
            bias = st + kn * ks * ci + kdx
            index_kernel = list(range(kernel_start, kernel_end))
            index_kernel.append(bias)
            kernel_slice_lst.append(index_kernel)
        slice_lst.append(kernel_slice_lst)
    return slice_lst


SLICE_LST = get_kernel_slices(INDEX_DICT)


# --------------------------------------------------------------------------- #
# Compile-time gather / mask constants for the token slab                      #
# --------------------------------------------------------------------------- #
def _build_gather_constants():
    idx = np.zeros((TOTAL_TOKENS, K_PAD), dtype=np.int32)       # gather indices
    wmask = np.zeros((TOTAL_TOKENS, K_PAD), dtype=np.float32)   # keep gathered data
    onehot = np.zeros((TOTAL_TOKENS, K_PAD), dtype=np.float32)  # 1.0 bias-fold column
    t = 0
    for l in range(N_LAYERS):
        ks = INDEX_DICT["kernel_size"][l]
        ci = INDEX_DICT["channels_in"][l]
        kn = INDEX_DICT["kernel_no"][l]
        st = INDEX_DICT["idx_start"][l]
        wlen = ks * ci
        col = COL_OFF[l]
        for kdx in range(kn):
            idx[t, col:col + wlen] = np.arange(st + kdx * wlen,
                                               st + (kdx + 1) * wlen)
            idx[t, col + wlen] = st + kn * wlen + kdx            # conv-bias element
            wmask[t, col:col + wlen + 1] = 1.0
            onehot[t, col + wlen + 1] = 1.0                      # folds Linear bias
            t += 1
    assert t == TOTAL_TOKENS
    return jnp.asarray(idx), jnp.asarray(wmask), jnp.asarray(onehot)


IDX_CONST, WMASK_CONST, ONEHOT_CONST = _build_gather_constants()


# --------------------------------------------------------------------------- #
# Pallas kernel: single gridless invocation, one MXU matmul                    #
# --------------------------------------------------------------------------- #
def _embedder_matmul_kernel(g_ref, w_ref, y_ref):
    # (B*T, 128) @ (128, D) -> (B*T, D), full f32 fidelity.
    y_ref[...] = jnp.dot(
        g_ref[...],
        w_ref[...],
        preferred_element_type=jnp.float32,
        precision=jax.lax.Precision.HIGHEST,
    ).astype(y_ref.dtype)


_VMEM_SPEC = pl.BlockSpec(memory_space=pltpu.MemorySpace.VMEM)


# --------------------------------------------------------------------------- #
# Init-time weight packing (call-invariant; hoisted out of the forward path)   #
# --------------------------------------------------------------------------- #
def pack_weights(params):
    """Stack per-layer Linear weights + bias rows into one (K_PAD, D) matrix."""
    w_cat = jnp.zeros((K_PAD, D_MODEL), jnp.float32)
    for l in range(N_LAYERS):
        i_dim = _i_dim(l)
        col = COL_OFF[l]
        w_cat = w_cat.at[col:col + i_dim, :].set(params["w"][l])   # (i_dim, D)
        w_cat = w_cat.at[col + i_dim, :].set(params["b"][l])       # Linear bias row
    return w_cat


# --------------------------------------------------------------------------- #
# jit-compiled forward                                                          #
# --------------------------------------------------------------------------- #
@jax.jit
def embedder_neuron_group_index_forward(x, w_cat):
    """x: (B, CHECKPOINT_LEN) f32; w_cat: (K_PAD, D) f32 -> (B, T, D)."""
    B = x.shape[0]
    # One gather + mask builds the block-diagonal token slab (B, T, K_PAD).
    g = x[:, IDX_CONST] * WMASK_CONST + ONEHOT_CONST
    g = g.reshape(B * TOTAL_TOKENS, K_PAD)

    y_flat = pl.pallas_call(
        _embedder_matmul_kernel,
        out_shape=jax.ShapeDtypeStruct((B * TOTAL_TOKENS, D_MODEL), jnp.float32),
        in_specs=[_VMEM_SPEC, _VMEM_SPEC],
        out_specs=_VMEM_SPEC,
    )(g, w_cat)

    return y_flat.reshape(B, TOTAL_TOKENS, D_MODEL)


# --------------------------------------------------------------------------- #
# Deterministic synthetic parameters (nn.Linear default init style)            #
# --------------------------------------------------------------------------- #
def init_params(key):
    p = {"w": [], "b": []}
    keys = jax.random.split(key, N_LAYERS)
    for l in range(N_LAYERS):
        fan_in = _i_dim(l)
        kw, kb = jax.random.split(keys[l])
        lim = 1.0 / math.sqrt(fan_in)
        # stored pre-transposed: (in_features, d_model) so y = x @ w + b
        p["w"].append(jax.random.uniform(kw, (fan_in, D_MODEL), jnp.float32, -lim, lim))
        p["b"].append(jax.random.uniform(kb, (D_MODEL,), jnp.float32, -lim, lim))
    return p


# --------------------------------------------------------------------------- #
# Pure-JAX reference mirroring the torch forward (split_kernels_threshold=0)   #
# --------------------------------------------------------------------------- #
def reference_forward(x, params):
    y_lst = []
    for idx, kernel_slice_lst in enumerate(SLICE_LST):
        for kernel_index in kernel_slice_lst:
            xi = x[:, jnp.asarray(kernel_index, dtype=jnp.int32)]      # (B, i_dim)
            y = jnp.dot(xi, params["w"][idx],
                        precision=jax.lax.Precision.HIGHEST) + params["b"][idx]
            y_lst.append(y)                                            # (B, D)
    return jnp.stack(y_lst, axis=1)                                    # (B, T, D)


if __name__ == "__main__":
    key = jax.random.PRNGKey(0)
    pkey, xkey = jax.random.split(key)
    params = init_params(pkey)
    w_cat = pack_weights(params)   # packed once at init, reused every forward

    # src: flattened checkpoint vector, length 774 (weights + biases of 3 conv layers)
    src = jax.random.normal(xkey, (BATCH, CHECKPOINT_LEN), jnp.float32)

    y = embedder_neuron_group_index_forward(src, w_cat)
    y = jax.block_until_ready(y)

    y_ref = reference_forward(src, params)
    assert y.shape == (BATCH, TOTAL_TOKENS, D_MODEL)
    max_err = float(jnp.max(jnp.abs(y - y_ref)))
    assert max_err < 1e-4, max_err

    print("KERNEL_OK")
</pallas_src>

<mosaic_0001>
module attributes {stable_mosaic.version = 11 : i64} {
  func.func @_embedder_matmul_kernel(%arg0: memref<36x128xf32, #tpu.memory_space<vmem>>, %arg1: memref<128x32xf32, #tpu.memory_space<vmem>>, %arg2: memref<36x32xf32, #tpu.memory_space<vmem>>) attributes {dimension_semantics = [], scalar_prefetch = 0 : i64, scratch_operands = 0 : i64, tpu.core_type = #tpu.core_type<tc>} {
    %c0 = arith.constant 0 : index
    %c0_0 = arith.constant 0 : index
    %0 = vector.load %arg0[%c0, %c0_0] : memref<36x128xf32, #tpu.memory_space<vmem>>, vector<36x128xf32>
    %c0_1 = arith.constant 0 : index
    %c0_2 = arith.constant 0 : index
    %1 = vector.load %arg1[%c0_1, %c0_2] : memref<128x32xf32, #tpu.memory_space<vmem>>, vector<128x32xf32>
    %cst = arith.constant dense<0.000000e+00> : vector<36x32xf32>
    %2 = tpu.matmul %0, %1, %cst {dimension_numbers = #tpu.dot_dimension_numbers<[1], [0], [0], [1], [0, 0, 1, 1], [], []>, precision = #tpu.contract_precision<fp32>} : vector<36x128xf32>, vector<128x32xf32>, vector<36x32xf32> -> vector<36x32xf32>
    %c0_3 = arith.constant 0 : index
    %c0_4 = arith.constant 0 : index
    %3 = vector.load %arg2[%c0_3, %c0_4] : memref<36x32xf32, #tpu.memory_space<vmem>>, vector<36x32xf32>
    tpu.vector_store %arg2[%c0_3, %c0_4], %2 {strides = array<i32>} : memref<36x32xf32, #tpu.memory_space<vmem>>, vector<36x32xf32>,
    return
  }
}

</mosaic_0001>

<bundles_post_ra>
// kernel: embedder_neuron_group_index_forward.1
= control target key start
LH: loop header
LB: loop body
LE: loop exit
PB: predicated region body
PF: predicated region fallthrough
CT: control target
= control target key end

     0   :  { %v1266_v0 = vmov 0.0   ;;  %vm1267_vm0 = vmmov 0   ;;  %vm845_vm1 = vcmask 261120   ;;  %vm850_vm2 = vcmask 257024   ;;  %s1836_s1 = inlined_call_operand.vmem [shape: f32[128,32], index: 1, kind: input, shape index: {}]   ;;  %s1837_s0 = inlined_call_operand.vmem [shape: f32[36,128], index: 0, kind: input, shape index: {}]   ;;  %s1838_s2 = inlined_call_operand.vmem [shape: f32[36,32], index: 2, kind: output, shape index: {}]  }
   0x1   :  { %982 = vmatprep.subr.mxu0 %v1266_v0  ;;  %v31_v1 = vld [vmem:[%s1836_s1 + $0x78] sm:$0xff]  ;;  %v30_v2 = vld [vmem:[%s1836_s1 + $0x70] sm:$0xff]  ;;  %v29_v3 = vld [vmem:[%s1836_s1 + $0x68] sm:$0xff]  ;;  %1029 = vmatprep.subr.mxu1 %v1266_v0 }
   0x2   :  { %v1294_v4 = vand.u32 4294901760, %v31_v1  ;;  %v1296_v5 = vand.u32 4294901760, %v30_v2  ;;  %v1298_v6 = vand.u32 4294901760, %v29_v3  ;;  %v28_v7 = vld [vmem:[%s1836_s1 + $0x60] sm:$0xff]  ;;  %v27_v8 = vld [vmem:[%s1836_s1 + $0x58] sm:$0xff]  ;;  %v26_v9 = vld [vmem:[%s1836_s1 + $0x50] sm:$0xff]  ;;  %1014 = vmatprep.mubr.msk.f32.mxu0 %vm1267_vm0, %v1266_v0  ;;  %1061 = vmatprep.mubr.msk.f32.mxu1 %vm1267_vm0, %v1266_v0 }
   0x3   :  { %v1313_v10 = vand.u32 4294901760, %v28_v7  ;;  %v1315_v11 = vand.u32 4294901760, %v27_v8  ;;  %v1317_v12 = vand.u32 4294901760, %v26_v9  ;;  %v25_v13 = vld [vmem:[%s1836_s1 + $0x48] sm:$0xff]  ;;  %v24_v14 = vld [vmem:[%s1836_s1 + $0x40] sm:$0xff]  ;;  %v23_v19 = vld [vmem:[%s1836_s1 + $0x38] sm:$0xff] }
   0x4   :  { %983 = vmatpush3.msra.mxu0 %v1294_v4  ;;  %v1327_v15 = vsub.f32 %v31_v1, %v1294_v4  ;;  %v1330_v16 = vsub.f32 %v30_v2, %v1296_v5  ;;  %v1332_v17 = vand.u32 4294901760, %v25_v13  ;;  %v1335_v18 = vsub.f32 %v29_v3, %v1298_v6  ;;  %v22_v26 = vld [vmem:[%s1836_s1 + $0x30] sm:$0xff]  ;;  %v21_v36 = vld [vmem:[%s1836_s1 + $0x28] sm:$0xff]  ;;  %v20_v41 = vld [vmem:[%s1836_s1 + $0x20] sm:$0xff] }
   0x5   :  { %984 = vmatprep.subr.mxu0 %v1266_v0  ;;  %v1342_v20 = vsub.f32 %v28_v7, %v1313_v10  ;;  %v1345_v21 = vsub.f32 %v27_v8, %v1315_v11  ;;  %v1351_v25 = vand.u32 4294901760, %v24_v14  ;;  %v1358_v28 = vand.u32 4294901760, %v23_v19  ;;  %v19_v49 = vld [vmem:[%s1836_s1 + $0x18] sm:$0xff]  ;;  %v11_v50 = vld [vmem:[%s1837_s0] sm:$0xff]  ;;  %v18_v54 = vld [vmem:[%s1836_s1 + $0x10] sm:$0xff] }
   0x6   :  { %985 = vmatpush3.msra.mxu0 %v1296_v5  ;;  %v166_v22 = vand.u32 4294901760, %v1327_v15  ;;  %v173_v23 = vand.u32 4294901760, %v1330_v16  ;;  %v180_v24 = vand.u32 4294901760, %v1335_v18  ;;  %v1362_v30 = vsub.f32 %v26_v9, %v1317_v12  ;;  %v17_v60 = vld [vmem:[%s1836_s1 + $0x8] sm:$0xff]  ;;  %v16_v7 = vld [vmem:[%s1836_s1] sm:$0xff] }
   0x7   :  { %986 = vmatprep.subr.mxu0 %v1266_v0  ;;  %v187_v27 = vand.u32 4294901760, %v1342_v20  ;;  %v194_v29 = vand.u32 4294901760, %v1345_v21  ;;  %v1375_v34 = vsub.f32 %v25_v13, %v1332_v17  ;;  %v1378_v35 = vand.u32 4294901760, %v22_v26 }
   0x8   :  { %987 = vmatpush3.msra.mxu0 %v1298_v6  ;;  %v167_v31 = vsub.f32 %v1327_v15, %v166_v22  ;;  %v174_v32 = vsub.f32 %v1330_v16, %v173_v23  ;;  %v181_v33 = vsub.f32 %v1335_v18, %v180_v24  ;;  %v201_v40 = vand.u32 4294901760, %v1362_v30 }
   0x9   :  { %988 = vmatprep.subr.mxu0 %v1266_v0  ;;  %v188_v39 = vsub.f32 %v1342_v20, %v187_v27  ;;  %v195_v42 = vsub.f32 %v1345_v21, %v194_v29  ;;  %v1396_v43 = vsub.f32 %v24_v14, %v1351_v25  ;;  %v1399_v45 = vand.u32 4294901760, %v21_v36 }
   0xa   :  { %989 = vmatpush3.msra.mxu0 %v1313_v10  ;;  %v168_v37 = vand.u32 4294901760, %v167_v31  ;;  %v175_v38 = vand.u32 4294901760, %v174_v32  ;;  %v182_v44 = vand.u32 4294901760, %v181_v33  ;;  %v208_v46 = vand.u32 4294901760, %v1375_v34 }
   0xb   :  { %990 = vmatprep.subr.mxu0 %v1266_v0  ;;  %v1403_v47 = vsub.f32 %v23_v19, %v1358_v28  ;;  %v1407_v48 = vand.u32 4294901760, %v20_v41  ;;  %v189_v51 = vand.u32 4294901760, %v188_v39  ;;  %v202_v52 = vsub.f32 %v1362_v30, %v201_v40 }
   0xc   :  { %991 = vmatpush3.msra.mxu0 %v1315_v11  ;;  %1030 = vmatpush3.msra.mxu1 %v168_v37  ;;  %v215_v53 = vand.u32 4294901760, %v1396_v43  ;;  %v1424_v55 = vsub.f32 %v22_v26, %v1378_v35  ;;  %v196_v56 = vand.u32 4294901760, %v195_v42  ;;  %v209_v58 = vsub.f32 %v1375_v34, %v208_v46 }
   0xd   :  { %992 = vmatprep.subr.mxu0 %v1266_v0  ;;  %1031 = vmatprep.subr.mxu1 %v1266_v0  ;;  %v222_v57 = vand.u32 4294901760, %v1403_v47  ;;  %v1433_v59 = vand.u32 4294901760, %v19_v49  ;;  %v1439_v61 = vsub.f32 %v21_v36, %v1399_v45  ;;  %v1441_v62 = vand.u32 4294901760, %v11_v50 }
   0xe   :  { %993 = vmatpush3.msra.mxu0 %v1317_v12  ;;  %1032 = vmatpush3.msra.mxu1 %v175_v38  ;;  %v1445_v63 = vand.u32 4294901760, %v18_v54  ;;  %v203_v1 = vand.u32 4294901760, %v202_v52  ;;  %v216_v2 = vsub.f32 %v1396_v43, %v215_v53  ;;  %v229_v3 = vand.u32 4294901760, %v1424_v55 }
   0xf   :  { %994 = vmatprep.subr.mxu0 %v1266_v0  ;;  %1033 = vmatprep.subr.mxu1 %v1266_v0  ;;  %v1456_v8 = vsub.f32 %v20_v41, %v1407_v48  ;;  %v223_v9 = vsub.f32 %v1403_v47, %v222_v57  ;;  %v1463_v13 = vand.u32 4294901760, %v17_v60  ;;  %v210_v14 = vand.u32 4294901760, %v209_v58 }
  0x10   :  { %995 = vmatpush3.msra.mxu0 %v1332_v17  ;;  %1034 = vmatpush3.msra.mxu1 %v182_v44  ;;  %v236_v19 = vand.u32 4294901760, %v1439_v61  ;;  %v1468_v26 = vsub.f32 %v11_v50, %v1441_v62  ;;  %v1471_v31 = vsub.f32 %v19_v49, %v1433_v59  ;;  %v1475_v32 = vand.u32 4294901760, %v16_v7 }
  0x11   :  { %996 = vmatprep.subr.mxu0 %v1266_v0  ;;  %1035 = vmatprep.subr.mxu1 %v1266_v0  ;;  %v217_v33 = vand.u32 4294901760, %v216_v2  ;;  %v230_v36 = vsub.f32 %v1424_v55, %v229_v3  ;;  %v243_v37 = vand.u32 4294901760, %v1456_v8  ;;  %v1483_v38 = vsub.f32 %v18_v54, %v1445_v63  ;;  %v12_v2 = vld [vmem:[%s1837_s0 + $0x8] sm:$0xff] }
  0x12   :  { %997 = vmatpush3.msra.mxu0 %v1351_v25  ;;  %1036 = vmatpush3.msra.mxu1 %v189_v51  ;;  %v224_v39 = vand.u32 4294901760, %v223_v9  ;;  %v237_v41 = vsub.f32 %v1439_v61, %v236_v19  ;;  %v115_v42 = vand.u32 4294901760, %v1468_v26  ;;  %v250_v44 = vand.u32 4294901760, %v1471_v31 }
  0x13   :  { %998 = vmatprep.subr.mxu0 %v1266_v0  ;;  %1037 = vmatprep.subr.mxu1 %v1266_v0  ;;  %v1494_v49 = vsub.f32 %v17_v60, %v1463_v13  ;;  %v231_v50 = vand.u32 4294901760, %v230_v36  ;;  %v244_v51 = vsub.f32 %v1456_v8, %v243_v37  ;;  %v1841_v52 = vand.u32 4294901760, %v1483_v38 }
  0x14   :  { %999 = vmatpush3.msra.mxu0 %v1358_v28  ;;  %1038 = vmatpush3.msra.mxu1 %v196_v56  ;;  %v1504_v54 = vsub.f32 %v16_v7, %v1475_v32  ;;  %v238_v56 = vand.u32 4294901760, %v237_v41  ;;  %v116_v58 = vsub.f32 %v1468_v26, %v115_v42  ;;  %v251_v60 = vsub.f32 %v1471_v31, %v250_v44 }
  0x15   :  { %1000 = vmatprep.subr.mxu0 %v1266_v0  ;;  %1039 = vmatprep.subr.mxu1 %v1266_v0  ;;  %v245_v7 = vand.u32 4294901760, %v244_v51  ;;  %v258_v9 = vsub.f32 %v1483_v38, %v1841_v52  ;;  %v1532_v41 = vand.u32 4294901760, %v12_v2 }
  0x16   :  { %1001 = vmatpush3.msra.mxu0 %v1378_v35  ;;  %1040 = vmatpush3.msra.mxu1 %v203_v1  ;;  %v1840_v1 = vand.u32 4294901760, %v1494_v49  ;;  %v252_v36 = vand.u32 4294901760, %v251_v60 }
  0x17   :  { %1002 = vmatprep.subr.mxu0 %v1266_v0  ;;  %1041 = vmatprep.subr.mxu1 %v1266_v0  ;;  %v1546_v60 = vsub.f32 %v12_v2, %v1532_v41 }
  0x18   :  { %1003 = vmatpush3.msra.mxu0 %v1399_v45  ;;  %1042 = vmatpush3.msra.mxu1 %v210_v14  ;;  %v1839_v14 = vand.u32 4294901760, %v1504_v54 }
  0x19   :  { %1004 = vmatprep.subr.mxu0 %v1266_v0  ;;  %1043 = vmatprep.subr.mxu1 %v1266_v0  ;;  %v125_v2 = vand.u32 4294901760, %v1546_v60 }
  0x1a   :  { %1005 = vmatpush3.msra.mxu0 %v1407_v48  ;;  %1044 = vmatpush3.msra.mxu1 %v217_v33  ;;  %v117_v33 = vand.u32 4294901760, %v116_v58  ;;  %v272_v51 = vsub.f32 %v1504_v54, %v1839_v14 }
  0x1b   :  { %1006 = vmatprep.subr.mxu0 %v1266_v0  ;;  %1045 = vmatprep.subr.mxu1 %v1266_v0 }
  0x1c   :  { %1007 = vmatpush3.msra.mxu0 %v1433_v59  ;;  %1046 = vmatpush3.msra.mxu1 %v224_v39  ;;  %v265_v39 = vsub.f32 %v1494_v49, %v1840_v1 }
  0x1d   :  { %1008 = vmatprep.subr.mxu0 %v1266_v0  ;;  %1047 = vmatprep.subr.mxu1 %v1266_v0 }
  0x1e   :  { %1009 = vmatpush3.msra.mxu0 %v1445_v63  ;;  %1048 = vmatpush3.msra.mxu1 %v231_v50  ;;  %v259_v50 = vand.u32 4294901760, %v258_v9  ;;  %v266_v58 = vand.u32 4294901760, %v265_v39  ;;  %v273_v9 = vand.u32 4294901760, %v272_v51 }
  0x1f   :  { %1010 = vmatprep.subr.mxu0 %v1266_v0  ;;  %1049 = vmatprep.subr.mxu1 %v1266_v0 }
  0x20   :  { %1011 = vmatpush3.msra.mxu0 %v1463_v13  ;;  %1050 = vmatpush3.msra.mxu1 %v238_v56  ;;  %v13_v56 = vld [vmem:[%s1837_s0 + $0x10] sm:$0xff] }
  0x21   :  { %1012 = vmatprep.subr.mxu0 %v1266_v0  ;;  %1051 = vmatprep.subr.mxu1 %v1266_v0 }
  0x22   :  { %1013 = vmatpush3.msra.mxu0 %v1475_v32  ;;  %1052 = vmatpush3.msra.mxu1 %v245_v7  ;;  %v1550_v7 = vand.u32 4294901760, %v13_v56 }
  0x23   :  { %1053 = vmatprep.subr.mxu1 %v1266_v0  ;;  %1076 = vmatprep.subr.mxu0 %v1266_v0 }
  0x24   :  { %1015 = vmatmul.mubr.f32.vlgmr.msra.gmra.mxu0 %v117_v33  ;;  %1054 = vmatpush3.msra.mxu1 %v252_v36  ;;  %v14_v33 = vld [vmem:[%s1837_s0 + $0x18] sm:$0xff]  ;;  %v1563_v36 = vsub.f32 %v13_v56, %v1550_v7  ;;  %v15_v56 = vld [vmem:[%s1837_s0 + $0x20] sm:$0xf] }
  0x25   :  { %1077 = vmatpush3.msra.mxu0 %v1327_v15  ;;  %1055 = vmatprep.subr.mxu1 %v1266_v0  ;;  %v1568_v39 = vand.u32 4294901760, %v14_v33  ;;  %v1595_v1 = vand.u32 4294901760, %v15_v56 }
  0x26   :  { %1078 = vmatprep.subr.mxu0 %v1266_v0  ;;  %1056 = vmatpush3.msra.mxu1 %v259_v50  ;;  %v126_v50 = vsub.f32 %v1546_v60, %v125_v2  ;;  %v135_v51 = vand.u32 4294901760, %v1563_v36 }
  0x27   :  { %1079 = vmatpush3.msra.mxu0 %v1330_v16  ;;  %1057 = vmatprep.subr.mxu1 %v1266_v0  ;;  %v1607_v52 = vsub.f32 %v15_v56, %v1595_v1 }
  0x28   :  { %1080 = vmatprep.subr.mxu0 %v1266_v0  ;;  %1058 = vmatpush3.msra.mxu1 %v266_v58  ;;  %v1586_v58 = vsub.f32 %v14_v33, %v1568_v39  ;;  %v136_v14 = vsub.f32 %v1563_v36, %v135_v51 }
  0x29   :  { %1081 = vmatpush3.msra.mxu0 %v1335_v18  ;;  %1059 = vmatprep.subr.mxu1 %v1266_v0 }
  0x2a   :  { %1082 = vmatprep.subr.mxu0 %v1266_v0  ;;  %1060 = vmatpush3.msra.mxu1 %v273_v9  ;;  %v127_v9 = vand.u32 4294901760, %v126_v50  ;;  %v145_v33 = vand.u32 4294901760, %v1586_v58  ;;  %v137_v50 = vand.u32 4294901760, %v136_v14  ;;  %v155_v14 = vand.u32 4294901760, %v1607_v52 }
  0x2b   :  { %1083 = vmatpush3.msra.mxu0 %v1342_v20  ;;  %1062 = vmatmul.mubr.f32.vlgmr.msra.gmra.mxu1 %v1441_v62 }
  0x2c   :  { %1084 = vmatprep.subr.mxu0 %v1266_v0  ;;  %1123 = vmatprep.subr.mxu1 %v1266_v0 }
  0x2d   :  { %1085 = vmatpush3.msra.mxu0 %v1345_v21  ;;  %1124 = vmatpush3.msra.mxu1 %v1294_v4 }
  0x2e   :  { %1086 = vmatprep.subr.mxu0 %v1266_v0  ;;  %1125 = vmatprep.subr.mxu1 %v1266_v0 }
  0x2f   :  { %1087 = vmatpush3.msra.mxu0 %v1362_v30  ;;  %1126 = vmatpush3.msra.mxu1 %v1296_v5 }
  0x30   :  { %1088 = vmatprep.subr.mxu0 %v1266_v0  ;;  %1127 = vmatprep.subr.mxu1 %v1266_v0 }
  0x31   :  { %1089 = vmatpush3.msra.mxu0 %v1375_v34  ;;  %1128 = vmatpush3.msra.mxu1 %v1298_v6 }
  0x32   :  { %1090 = vmatprep.subr.mxu0 %v1266_v0  ;;  %1129 = vmatprep.subr.mxu1 %v1266_v0 }
  0x33   :  { %1017 = vmatprep.mubr.msk.f32.mxu0 %vm1267_vm0, %v1266_v0  ;;  %1091 = vmatpush3.msra.mxu0 %v1396_v43 }
  0x34   :  { %1130 = vmatpush3.msra.mxu1 %v1313_v10  ;;  %1018 = vmatmul.mubr.f32.gmra.mxu0 %v127_v9  ;;  %v146_v9 = vsub.f32 %v1586_v58, %v145_v33 }
  0x35   :  { %1092 = vmatprep.subr.mxu0 %v1266_v0  ;;  %1131 = vmatprep.subr.mxu1 %v1266_v0 }
  0x36   :  { %1093 = vmatpush3.msra.mxu0 %v1403_v47  ;;  %1132 = vmatpush3.msra.mxu1 %v1315_v11  ;;  %v147_v56 = vand.u32 4294901760, %v146_v9 }
  0x37   :  { %1094 = vmatprep.subr.mxu0 %v1266_v0  ;;  %1133 = vmatprep.subr.mxu1 %v1266_v0 }
  0x38   :  { %1020 = vmatprep.mubr.msk.f32.mxu0 %vm1267_vm0, %v1266_v0  ;;  %1095 = vmatpush3.msra.mxu0 %v1424_v55 }
  0x39   :  { %1134 = vmatpush3.msra.mxu1 %v1317_v12  ;;  %1021 = vmatmul.mubr.f32.gmra.mxu0 %v137_v50  ;;  %v156_v50 = vsub.f32 %v1607_v52, %v155_v14 }
  0x3a   :  { %1096 = vmatprep.subr.mxu0 %v1266_v0  ;;  %1135 = vmatprep.subr.mxu1 %v1266_v0 }
  0x3b   :  { %1097 = vmatpush3.msra.mxu0 %v1439_v61  ;;  %1136 = vmatpush3.msra.mxu1 %v1332_v17  ;;  %v157_v9 = vand.u32 4294901760, %v156_v50 }
  0x3c   :  { %1064 = vmatprep.mubr.msk.f32.mxu1 %vm1267_vm0, %v1266_v0  ;;  %1098 = vmatprep.subr.mxu0 %v1266_v0 }
  0x3d   :  { %1137 = vmatprep.subr.mxu1 %v1266_v0  ;;  %1023 = vmatprep.mubr.msk.f32.mxu0 %vm1267_vm0, %v1266_v0 }
  0x3e   :  { %1065 = vmatmul.mubr.f32.gmra.mxu1 %v1532_v41  ;;  %1099 = vmatpush3.msra.mxu0 %v1456_v8 }
  0x3f   :  { %1138 = vmatpush3.msra.mxu1 %v1351_v25  ;;  %1024 = vmatmul.mubr.f32.gmra.mxu0 %v147_v56 }
  0x40   :  { %1100 = vmatprep.subr.mxu0 %v1266_v0  ;;  %1139 = vmatprep.subr.mxu1 %v1266_v0 }
  0x41   :  { %1101 = vmatpush3.msra.mxu0 %v1471_v31  ;;  %1140 = vmatpush3.msra.mxu1 %v1358_v28 }
  0x42   :  { %1067 = vmatprep.mubr.msk.f32.mxu1 %vm1267_vm0, %v1266_v0  ;;  %1102 = vmatprep.subr.mxu0 %v1266_v0 }
  0x43   :  { %1141 = vmatprep.subr.mxu1 %v1266_v0  ;;  %1026 = vmatprep.mubr.msk.f32.mxu0 %vm1267_vm0, %v1266_v0 }
  0x44   :  { %1068 = vmatmul.mubr.f32.gmra.mxu1 %v1550_v7  ;;  %1103 = vmatpush3.msra.mxu0 %v1483_v38 }
  0x45   :  { %1142 = vmatpush3.msra.mxu1 %v1378_v35  ;;  %1027 = vmatmul.mubr.f32.gmra.mxu0 %v157_v9 }
  0x46   :  { %1104 = vmatprep.subr.mxu0 %v1266_v0  ;;  %1143 = vmatprep.subr.mxu1 %v1266_v0 }
  0x47   :  { %1105 = vmatpush3.msra.mxu0 %v1494_v49  ;;  %1144 = vmatpush3.msra.mxu1 %v1399_v45 }
  0x48   :  { %1070 = vmatprep.mubr.msk.f32.mxu1 %vm1267_vm0, %v1266_v0  ;;  %1106 = vmatprep.subr.mxu0 %v1266_v0 }
  0x49   :  { %1145 = vmatprep.subr.mxu1 %v1266_v0  ;;  %1071 = vmatmul.mubr.f32.gmra.mxu1 %v1568_v39 }
  0x4a   :  { %1107 = vmatpush3.msra.mxu0 %v1504_v54  ;;  %1108 = vmatprep.mubr.msk.f32.mxu0 %vm1267_vm0, %v1266_v0 }
  0x4b   :  { %1146 = vmatpush3.msra.mxu1 %v1407_v48  ;;  %1109 = vmatmul.mubr.f32.vlgmr.msra.gmra.mxu0 %v1468_v26 }
  0x4c   :  { %1147 = vmatprep.subr.mxu1 %v1266_v0  ;;  %1170 = vmatprep.subr.mxu0 %v1266_v0 }
  0x4d   :  { %1148 = vmatpush3.msra.mxu1 %v1433_v59  ;;  %1171 = vmatpush3.msra.mxu0 %v166_v22 }
  0x4e   :  { %1073 = vmatprep.mubr.msk.f32.mxu1 %vm1267_vm0, %v1266_v0  ;;  %1149 = vmatprep.subr.mxu1 %v1266_v0 }
  0x4f   :  { %1172 = vmatprep.subr.mxu0 %v1266_v0  ;;  %1074 = vmatmul.mubr.f32.gmra.mxu1 %v1595_v1 }
  0x50   :  { %1111 = vmatprep.mubr.msk.f32.mxu0 %vm1267_vm0, %v1266_v0  ;;  %1150 = vmatpush3.msra.mxu1 %v1445_v63 }
  0x51   :  { %1173 = vmatpush3.msra.mxu0 %v173_v23  ;;  %1151 = vmatprep.subr.mxu1 %v1266_v0 }
  0x52   :  { %1112 = vmatmul.mubr.f32.gmra.mxu0 %v1546_v60  ;;  %1174 = vmatprep.subr.mxu0 %v1266_v0 }
  0x53   :  { %1152 = vmatpush3.msra.mxu1 %v1463_v13  ;;  %1175 = vmatpush3.msra.mxu0 %v180_v24 }
  0x54   :  { %1153 = vmatprep.subr.mxu1 %v1266_v0  ;;  %1176 = vmatprep.subr.mxu0 %v1266_v0 }
  0x55   :  { %1114 = vmatprep.mubr.msk.f32.mxu0 %vm1267_vm0, %v1266_v0  ;;  %1154 = vmatpush3.msra.mxu1 %v1475_v32 }
  0x56   :  { %1155 = vmatprep.mubr.msk.f32.mxu1 %vm1267_vm0, %v1266_v0  ;;  %1177 = vmatpush3.msra.mxu0 %v187_v27 }
  0x57   :  { %1115 = vmatmul.mubr.f32.gmra.mxu0 %v1563_v36  ;;  %1156 = vmatmul.mubr.f32.vlgmr.msra.gmra.mxu1 %v115_v42 }
  0x58   :  { %1178 = vmatprep.subr.mxu0 %v1266_v0  ;;  %1217 = vmatprep.subr.mxu1 %v1266_v0 }
  0x59   :  { %1179 = vmatpush3.msra.mxu0 %v194_v29  ;;  %1218 = vmatpush3.msra.mxu1 %v1294_v4  ;;  %v1842_v4 = vand.u32 4294901760, %v1483_v38 }
  0x5a   :  { %1180 = vmatprep.subr.mxu0 %v1266_v0  ;;  %1219 = vmatprep.subr.mxu1 %v1266_v0 }
  0x5b   :  { %1117 = vmatprep.mubr.msk.f32.mxu0 %vm1267_vm0, %v1266_v0  ;;  %1158 = vmatprep.mubr.msk.f32.mxu1 %vm1267_vm0, %v1266_v0 }
  0x5c   :  { %1181 = vmatpush3.msra.mxu0 %v201_v40  ;;  %1220 = vmatpush3.msra.mxu1 %v1296_v5  ;;  %v1843_v5 = vand.u32 4294901760, %v1494_v49 }
  0x5d   :  { %1118 = vmatmul.mubr.f32.gmra.mxu0 %v1586_v58  ;;  %1159 = vmatmul.mubr.f32.gmra.mxu1 %v125_v2 }
  0x5e   :  { %1182 = vmatprep.subr.mxu0 %v1266_v0  ;;  %1221 = vmatprep.subr.mxu1 %v1266_v0 }
  0x5f   :  { %1183 = vmatpush3.msra.mxu0 %v208_v46  ;;  %1222 = vmatpush3.msra.mxu1 %v1298_v6  ;;  %v1844_v6 = vand.u32 4294901760, %v1504_v54 }
  0x60   :  { %1184 = vmatprep.subr.mxu0 %v1266_v0  ;;  %1223 = vmatprep.subr.mxu1 %v1266_v0 }
  0x61   :  { %1120 = vmatprep.mubr.msk.f32.mxu0 %vm1267_vm0, %v1266_v0  ;;  %1161 = vmatprep.mubr.msk.f32.mxu1 %vm1267_vm0, %v1266_v0 }
  0x62   :  { %1185 = vmatpush3.msra.mxu0 %v215_v53  ;;  %1224 = vmatpush3.msra.mxu1 %v1313_v10 }
  0x63   :  { %1121 = vmatmul.mubr.f32.gmra.mxu0 %v1607_v52  ;;  %1162 = vmatmul.mubr.f32.gmra.mxu1 %v135_v51 }
  0x64   :  { %1186 = vmatprep.subr.mxu0 %v1266_v0  ;;  %1225 = vmatprep.subr.mxu1 %v1266_v0 }
  0x65   :  { %1187 = vmatpush3.msra.mxu0 %v222_v57  ;;  %1226 = vmatpush3.msra.mxu1 %v1315_v11 }
  0x66   :  { %1188 = vmatprep.subr.mxu0 %v1266_v0  ;;  %1227 = vmatprep.subr.mxu1 %v1266_v0 }
  0x67   :  { %1164 = vmatprep.mubr.msk.f32.mxu1 %vm1267_vm0, %v1266_v0  ;;  %1189 = vmatpush3.msra.mxu0 %v229_v3 }
  0x68   :  { %1228 = vmatpush3.msra.mxu1 %v1317_v12  ;;  %1190 = vmatprep.subr.mxu0 %v1266_v0 }
  0x69   :  { %1165 = vmatmul.mubr.f32.gmra.mxu1 %v145_v33  ;;  %1229 = vmatprep.subr.mxu1 %v1266_v0 }
  0x6a   :  { %1191 = vmatpush3.msra.mxu0 %v236_v19  ;;  %1230 = vmatpush3.msra.mxu1 %v1332_v17 }
  0x6b   :  { %1192 = vmatprep.subr.mxu0 %v1266_v0  ;;  %1231 = vmatprep.subr.mxu1 %v1266_v0 }
  0x6c   :  { %1167 = vmatprep.mubr.msk.f32.mxu1 %vm1267_vm0, %v1266_v0  ;;  %1193 = vmatpush3.msra.mxu0 %v243_v37 }
  0x6d   :  { %1232 = vmatpush3.msra.mxu1 %v1351_v25  ;;  %1194 = vmatprep.subr.mxu0 %v1266_v0 }
  0x6e   :  { %1168 = vmatmul.mubr.f32.gmra.mxu1 %v155_v14  ;;  %1233 = vmatprep.subr.mxu1 %v1266_v0 }
  0x6f   :  { %1195 = vmatpush3.msra.mxu0 %v250_v44  ;;  %1234 = vmatpush3.msra.mxu1 %v1358_v28 }
  0x70   :  { %1196 = vmatprep.subr.mxu0 %v1266_v0  ;;  %1235 = vmatprep.subr.mxu1 %v1266_v0 }
  0x71   :  { %1197 = vmatpush3.msra.mxu0 %v1842_v4  ;;  %1236 = vmatpush3.msra.mxu1 %v1378_v35 }
  0x72   :  { %1198 = vmatprep.subr.mxu0 %v1266_v0  ;;  %1237 = vmatprep.subr.mxu1 %v1266_v0 }
  0x73   :  { %1199 = vmatpush3.msra.mxu0 %v1843_v5  ;;  %1238 = vmatpush3.msra.mxu1 %v1399_v45 }
  0x74   :  { %1200 = vmatprep.subr.mxu0 %v1266_v0  ;;  %1239 = vmatprep.subr.mxu1 %v1266_v0 }
  0x75   :  { %1201 = vmatpush3.msra.mxu0 %v1844_v6  ;;  %1202 = vmatprep.mubr.msk.f32.mxu0 %vm1267_vm0, %v1266_v0 }
  0x76   :  { %1240 = vmatpush3.msra.mxu1 %v1407_v48  ;;  %1203 = vmatmul.mubr.f32.vlgmr.msra.gmra.mxu0 %v1441_v62 }
  0x77   :  { %1241 = vmatprep.subr.mxu1 %v1266_v0  ;;  %1205 = vmatprep.mubr.msk.f32.mxu0 %vm1267_vm0, %v1266_v0 }
  0x78   :  { %1242 = vmatpush3.msra.mxu1 %v1433_v59  ;;  %1249 = vmatprep.mubr.msk.f32.mxu1 %vm1267_vm0, %v1266_v0 }
  0x79   :  { %1243 = vmatprep.subr.mxu1 %v1266_v0 }
  0x7a   :  { %1244 = vmatpush3.msra.mxu1 %v1445_v63  ;;  %1206 = vmatmul.mubr.f32.gmra.mxu0 %v1532_v41 }
  0x7b   :  { %1245 = vmatprep.subr.mxu1 %v1266_v0  ;;  %1208 = vmatprep.mubr.msk.f32.mxu0 %vm1267_vm0, %v1266_v0 }
  0x7c   :  { %1246 = vmatpush3.msra.mxu1 %v1463_v13 }
  0x7d   :  { %1247 = vmatprep.subr.mxu1 %v1266_v0 }
  0x7e   :  { %1248 = vmatpush3.msra.mxu1 %v1475_v32  ;;  %1209 = vmatmul.mubr.f32.gmra.mxu0 %v1550_v7 }
  0x7f   :  { %1250 = vmatmul.mubr.f32.vlgmr.msra.gmra.mxu1 %v1441_v62  ;;  %1211 = vmatprep.mubr.msk.f32.mxu0 %vm1267_vm0, %v1266_v0 }
  0x80   :  { %1252 = vmatprep.mubr.msk.f32.mxu1 %vm1267_vm0, %v1266_v0 }
  0x82   :  { %1212 = vmatmul.mubr.f32.gmra.mxu0 %v1568_v39 }
  0x83   :  { %1253 = vmatmul.mubr.f32.gmra.mxu1 %v1532_v41  ;;  %1214 = vmatprep.mubr.msk.f32.mxu0 %vm1267_vm0, %v1266_v0 }
  0x84   :  { %1255 = vmatprep.mubr.msk.f32.mxu1 %vm1267_vm0, %v1266_v0 }
  0x86   :  { %1215 = vmatmul.mubr.f32.gmra.mxu0 %v1595_v1 }
  0x87   :  { %1256 = vmatmul.mubr.f32.gmra.mxu1 %v1550_v7 }
  0x88   :  { %1258 = vmatprep.mubr.msk.f32.mxu1 %vm1267_vm0, %v1266_v0 }
  0x8b   :  { %1259 = vmatmul.mubr.f32.gmra.mxu1 %v1568_v39 }
  0x8c   :  { %1261 = vmatprep.mubr.msk.f32.mxu1 %vm1267_vm0, %v1266_v0 }
  0x8f   :  { %1262 = vmatmul.mubr.f32.gmra.mxu1 %v1595_v1 }
  0xe4   :  { %v119_v10 = vpop.f32.mrf.mxu0 }
  0xe6   :  { %v1016_v11 = vpop.f32.mrf.mxu0 }
  0xeb   :  { %v310_v12 = vpop.f32.mrf.mxu1 }
  0xec   :  { %v311_v15 = vadd.f32 %v310_v12, %v119_v10 }
  0xed   :  { %v1063_v16 = vpop.f32.mrf.mxu1 }
  0xf4   :  { %v129_v17 = vpop.f32.mrf.mxu0 }
  0xf6   :  { %v1019_v18 = vpop.f32.mrf.mxu0 }
  0xf9   :  { %v139_v20 = vpop.f32.mrf.mxu0 }
  0xfb   :  { %v1022_v21 = vpop.f32.mrf.mxu0 }
  0xfe   :  { %v316_v22 = vpop.f32.mrf.mxu1 }
  0xff   :  { %v149_v23 = vpop.f32.mrf.mxu0  ;;  %v317_v52 = vadd.f32 %v316_v22, %v129_v17 }
 0x100   :  { %v1066_v24 = vpop.f32.mrf.mxu1 }
 0x101   :  { %v1025_v25 = vpop.f32.mrf.mxu0 }
 0x104   :  { %v322_v27 = vpop.f32.mrf.mxu1 }
 0x105   :  { %v159_v28 = vpop.f32.mrf.mxu0  ;;  %v323_v36 = vadd.f32 %v322_v27, %v139_v20 }
 0x106   :  { %v1069_v29 = vpop.f32.mrf.mxu1 }
 0x107   :  { %v1028_v30 = vpop.f32.mrf.mxu0 }
 0x109   :  { %v328_v0 = vpop.f32.mrf.mxu1 }
 0x10a   :  { %v329_v4 = vadd.f32 %v328_v0, %v149_v23 }
 0x10b   :  { %v438_v34 = vpop.f32.mrf.mxu0  ;;  %v1072_v35 = vpop.f32.mrf.mxu1 }
 0x10c   :  { %v439_v44 = vadd.f32 %v438_v34, %v311_v15 }
 0x10d   :  { %v1110_v40 = vpop.f32.mrf.mxu0 }
 0x10f   :  { %v334_v43 = vpop.f32.mrf.mxu1 }
 0x110   :  { %v335_v18 = vadd.f32 %v334_v43, %v159_v28 }
 0x111   :  { %v1075_v45 = vpop.f32.mrf.mxu1 }
 0x112   :  { %v445_v46 = vpop.f32.mrf.mxu0 }
 0x113   :  { %v446_v41 = vadd.f32 %v445_v46, %v317_v52 }
 0x114   :  { %v1113_v47 = vpop.f32.mrf.mxu0 }
 0x117   :  { %v452_v48 = vpop.f32.mrf.mxu0  ;;  %v555_v53 = vpop.f32.mrf.mxu1 }
 0x118   :  { %v556_v54 = vadd.f32 %v555_v53, %v439_v44  ;;  %v453_v14 = vadd.f32 %v452_v48, %v323_v36 }
 0x119   :  { %v1116_v55 = vpop.f32.mrf.mxu0  ;;  %v1157_v57 = vpop.f32.mrf.mxu1 }
 0x11d   :  { %v459_v59 = vpop.f32.mrf.mxu0  ;;  %v563_v61 = vpop.f32.mrf.mxu1 }
 0x11e   :  { %v564_v39 = vadd.f32 %v563_v61, %v446_v41  ;;  %v460_v12 = vadd.f32 %v459_v59, %v329_v4 }
 0x11f   :  { %v1119_v62 = vpop.f32.mrf.mxu0  ;;  %v1160_v63 = vpop.f32.mrf.mxu1 }
 0x123   :  { %v466_v3 = vpop.f32.mrf.mxu0  ;;  %v571_v8 = vpop.f32.mrf.mxu1 }
 0x124   :  { %v572_v5 = vadd.f32 %v571_v8, %v453_v14  ;;  %v467_v25 = vadd.f32 %v466_v3, %v335_v18 }
 0x125   :  { %v1163_v13 = vpop.f32.mrf.mxu1  ;;  %v1122_v19 = vpop.f32.mrf.mxu0 }
 0x129   :  { %v579_v26 = vpop.f32.mrf.mxu1 }
 0x12a   :  { %v580_v20 = vadd.f32 %v579_v26, %v460_v12 }
 0x12b   :  { %v1166_v31 = vpop.f32.mrf.mxu1 }
 0x12e   :  { %v587_v32 = vpop.f32.mrf.mxu1 }
 0x12f   :  { %v588_v29 = vadd.f32 %v587_v32, %v467_v25 }
 0x130   :  { %v1169_v37 = vpop.f32.mrf.mxu1 }
 0x136   :  { %v706_v38 = vpop.f32.mrf.mxu0 }
 0x137   :  { %v707_v60 = vadd.f32 %v706_v38, %v556_v54 }
 0x138   :  { %v1204_v42 = vpop.f32.mrf.mxu0 }
 0x13a   :  { %v712_v49 = vpop.f32.mrf.mxu0 }
 0x13b   :  { %v713_v56 = vadd.f32 %v712_v49, %v564_v39 }
 0x13c   :  { %v1207_v1 = vpop.f32.mrf.mxu0 }
 0x13e   :  { %v718_v7 = vpop.f32.mrf.mxu0 }
 0x13f   :  { %v817_v2 = vpop.f32.mrf.mxu1  ;;  %v719_v15 = vadd.f32 %v718_v7, %v572_v5 }
 0x140   :  { %v818_v51 = vadd.f32 %v817_v2, %v707_v60  ;;  %v1210_v58 = vpop.f32.mrf.mxu0 }
 0x141   :  { %v1251_v33 = vpop.f32.mrf.mxu1 }
 0x142   :  { %846 = vst.msk [vmem:[%s1838_s2] sm:$0xff] %vm845_vm1, %v818_v51  ;;  %v724_v50 = vpop.f32.mrf.mxu0 }
 0x143   :  { %v823_v9 = vpop.f32.mrf.mxu1  ;;  %v725_v23 = vadd.f32 %v724_v50, %v580_v20 }
 0x144   :  { %v824_v6 = vadd.f32 %v823_v9, %v713_v56  ;;  %v1213_v10 = vpop.f32.mrf.mxu0 }
 0x145   :  { %v1254_v11 = vpop.f32.mrf.mxu1 }
 0x146   :  { %847 = vst.msk [vmem:[%s1838_s2 + $0x8] sm:$0xff] %vm845_vm1, %v824_v6  ;;  %v730_v16 = vpop.f32.mrf.mxu0 }
 0x147   :  { %v829_v17 = vpop.f32.mrf.mxu1  ;;  %v731_v34 = vadd.f32 %v730_v16, %v588_v29 }
 0x148   :  { %v830_v21 = vadd.f32 %v829_v17, %v719_v15  ;;  %v1216_v22 = vpop.f32.mrf.mxu0 }
 0x149   :  { %v1257_v24 = vpop.f32.mrf.mxu1 }
 0x14a   :  { %848 = vst.msk [vmem:[%s1838_s2 + $0x10] sm:$0xff] %vm845_vm1, %v830_v21 }
 0x14b   :  { %v835_v27 = vpop.f32.mrf.mxu1 }
 0x14c   :  { %v836_v30 = vadd.f32 %v835_v27, %v725_v23 }
 0x14d   :  { %v1260_v0 = vpop.f32.mrf.mxu1 }
 0x14e   :  { %849 = vst.msk [vmem:[%s1838_s2 + $0x18] sm:$0xff] %vm845_vm1, %v836_v30 }
 0x14f   :  { %v841_v28 = vpop.f32.mrf.mxu1 }
 0x150   :  { %v842_v35 = vadd.f32 %v841_v28, %v731_v34 }
 0x151   :  { %v1263_v40 = vpop.f32.mrf.mxu1 }
 0x152   :  { %851 = vst.msk [vmem:[%s1838_s2 + $0x20] sm:$0xf] %vm850_vm2, %v842_v35 }

</bundles_post_ra>
